<compile_context>
chip_gen: v5e
topology: v5e:2x2
jax: 0.10.0
libtpu: 0.0.40
codegen_flags: <defaults>
</compile_context>

<pallas_src>
import functools

import jax
import jax.numpy as jnp
from jax.experimental import pallas as pl
from jax.experimental.pallas import tpu as pltpu


def _round_up(x: int, m: int) -> int:
    return (x + m - 1) // m * m


# --------------------------------------------------------------------------
# Kernels
# --------------------------------------------------------------------------
def _vh_kernel_single_k(x_ref, w_ref, b_ref, o_ref):
    """out = x @ W + b  — whole reduction dim in one block, no accumulator."""
    o_ref[...] = (
        jnp.dot(x_ref[...], w_ref[...], preferred_element_type=jnp.float32)
        + b_ref[...]
    ).astype(o_ref.dtype)


def _vh_kernel_multi_k(x_ref, w_ref, b_ref, o_ref, acc_ref):
    """out = x @ W + b  — K-tiled with an f32 VMEM accumulator (F > 4096)."""
    k = pl.program_id(2)

    @pl.when(k == 0)
    def _init():
        acc_ref[...] = jnp.zeros_like(acc_ref)

    acc_ref[...] += jnp.dot(x_ref[...], w_ref[...],
                            preferred_element_type=jnp.float32)

    @pl.when(k == pl.num_programs(2) - 1)
    def _finalize():
        o_ref[...] = (acc_ref[...] + b_ref[...]).astype(o_ref.dtype)


# --------------------------------------------------------------------------
# Weight fusion (run at weight-update time, cache the result across steps)
# --------------------------------------------------------------------------
def fuse_value_head_params(Wv, bv, Ws=None, bs=None, *, out_features, num_atoms,
                           use_state_value_head, matmul_dtype=jnp.bfloat16):
    """Fold the dueling recombination into the weights and pack all heads.

    Wv : (H, F, O*A)   per-head value weights (stored transposed vs nn.Linear,
                       columns out_features-major / num_atoms-minor)
    bv : (H, 1, O*A) or (H, O*A)
    Ws : (H, F, A), bs : (H, 1, A) or (H, A)   (only if use_state_value_head)

    Returns (W_packed (F, Np) in matmul_dtype, b_packed (1, Np) float32, N)
    where N = H*O*A and Np = round_up(N, 128).
    """
    H, F, OA = Wv.shape
    O, A = out_features, num_atoms
    assert OA == O * A

    # Fold in float32 so 1/out_features is not rounded.
    Wv32 = Wv.astype(jnp.float32)
    bv32 = bv.astype(jnp.float32).reshape(H, OA)
    if use_state_value_head:
        eye_a = jnp.eye(A, dtype=jnp.float32)
        m_mean = jnp.tile(eye_a, (O, 1)) / O              # (OA, A) per-atom mean
        m_bcast = jnp.tile(eye_a, (1, O))                 # (A, OA) broadcast back
        proj = jnp.eye(OA, dtype=jnp.float32) - m_mean @ m_bcast   # (OA, OA)
        Ws32 = Ws.astype(jnp.float32)
        bs32 = bs.astype(jnp.float32).reshape(H, A)
        W_fused = (jnp.einsum('hfo,op->hfp', Wv32, proj)
                   + jnp.einsum('hfa,ap->hfp', Ws32, m_bcast))     # (H, F, OA)
        b_fused = bv32 @ proj + bs32 @ m_bcast                     # (H, OA)
    else:
        W_fused, b_fused = Wv32, bv32

    # Pack heads into the lane dimension (head-major columns) and pad to 128.
    N = H * OA
    Np = _round_up(N, 128)
    W2 = jnp.transpose(W_fused, (1, 0, 2)).reshape(F, N)           # (F, H*OA)
    b2 = b_fused.reshape(1, N)
    if Np != N:
        W2 = jnp.pad(W2, ((0, 0), (0, Np - N)))
        b2 = jnp.pad(b2, ((0, 0), (0, Np - N)))

    # Operands in bf16 (default); bias stays f32 so the add happens in f32.
    return W2.astype(matmul_dtype), b2, N


# --------------------------------------------------------------------------
# Per-step forward: one GEMM + bias add on the packed weights
# --------------------------------------------------------------------------
def value_head_apply(state, W_packed, b_packed, *, n_cols, out_features,
                     num_atoms, block_b=None, block_n=None, block_k=None):
    """state (B, F) @ W_packed (F, Np) + b_packed -> (B, H, O, A)."""
    B, F = state.shape
    Fw, Np = W_packed.shape
    assert Fw == F and Np % 128 == 0

    mm_dtype = W_packed.dtype
    mm_size = jnp.dtype(mm_dtype).itemsize
    out_size = jnp.dtype(state.dtype).itemsize
    x = state.astype(mm_dtype)

    # ---- batch tiling: >= 2 "parallel" steps when possible (v7x megacore),
    # ---- cap at 512 (v6e sweet spot).  No padding — ragged last block is
    # ---- masked on the output store.
    if block_b is not None:
        TB = block_b
    elif B <= 8:
        TB = B                      # block == full dim (allowed when < 8)
    else:
        TB = min(512, _round_up(pl.cdiv(B, 2), 8))
    n_b = pl.cdiv(B, TB)

    # ---- output-column tiling: bounds per-step VMEM for wide quantile heads.
    TN = block_n if block_n is not None else min(Np, 512)
    n_n = pl.cdiv(Np, TN)

    # ---- reduction tiling: prefer K-grid == 1 (no accumulator, weights
    # ---- DMA'd once instead of re-streamed per batch tile).
    TK = block_k if block_k is not None else (F if F <= 4096 else 1024)
    single_k = TK >= F

    cost = pl.CostEstimate(
        flops=2 * B * F * Np,
        transcendentals=0,
        bytes_accessed=(B * F + F * Np) * mm_size + Np * 4 + B * Np * out_size,
    )

    if single_k:
        vmem = 2 * (TB * F * mm_size + F * TN * mm_size + TN * 4
                    + TB * TN * out_size)
        vmem_limit = min(64 * 1024 * 1024, max(2 * vmem, 32 * 1024 * 1024))
        out_pad = pl.pallas_call(
            _vh_kernel_single_k,
            out_shape=jax.ShapeDtypeStruct((B, Np), state.dtype),
            grid=(n_b, n_n),
            in_specs=[
                pl.BlockSpec((TB, F), lambda i, j: (i, 0)),   # state tile
                pl.BlockSpec((F, TN), lambda i, j: (0, j)),   # fused weights
                pl.BlockSpec((1, TN), lambda i, j: (0, j)),   # fused bias (f32)
            ],
            out_specs=pl.BlockSpec((TB, TN), lambda i, j: (i, j)),
            compiler_params=pltpu.CompilerParams(
                dimension_semantics=("parallel", "parallel"),
                vmem_limit_bytes=vmem_limit),
            cost_estimate=cost,
        )(x, W_packed, b_packed)
    else:
        # Big-F fallback (F > 4096): K-tiled with an f32 accumulator.  Zero
        # K-padding is required for correctness; for production, fold the
        # K-pad of W_packed into fuse_value_head_params so it is cached too.
        Fp = _round_up(F, TK)
        if Fp != F:
            x = jnp.pad(x, ((0, 0), (0, Fp - F)))
            W_packed = jnp.pad(W_packed, ((0, Fp - F), (0, 0)))
        n_k = Fp // TK
        vmem = (2 * (TB * TK * mm_size + TK * TN * mm_size + TN * 4
                     + TB * TN * out_size) + TB * TN * 4)
        vmem_limit = min(64 * 1024 * 1024, max(2 * vmem, 32 * 1024 * 1024))
        out_pad = pl.pallas_call(
            _vh_kernel_multi_k,
            out_shape=jax.ShapeDtypeStruct((B, Np), state.dtype),
            grid=(n_b, n_n, n_k),
            in_specs=[
                pl.BlockSpec((TB, TK), lambda i, j, k: (i, k)),
                pl.BlockSpec((TK, TN), lambda i, j, k: (k, j)),
                pl.BlockSpec((1, TN), lambda i, j, k: (0, j)),
            ],
            out_specs=pl.BlockSpec((TB, TN), lambda i, j, k: (i, j)),
            scratch_shapes=[pltpu.VMEM((TB, TN), jnp.float32)],
            compiler_params=pltpu.CompilerParams(
                dimension_semantics=("parallel", "parallel", "arbitrary"),
                vmem_limit_bytes=vmem_limit),
            cost_estimate=cost,
        )(x, W_packed, b_packed)

    out2d = out_pad[:, :n_cols]                       # drop lane padding
    return out2d.reshape(B, -1, out_features, num_atoms)   # (B, H, O, A)


def value_head_forward(state, Wv, bv, Ws=None, bs=None, *, out_features,
                       num_atoms, use_state_value_head,
                       matmul_dtype=jnp.bfloat16, **tile_kwargs):
    """Convenience one-shot forward (fuses weights every call).

    For training/inference loops call fuse_value_head_params once per weight
    update and value_head_apply per step."""
    W_packed, b_packed, n_cols = fuse_value_head_params(
        Wv, bv, Ws, bs, out_features=out_features, num_atoms=num_atoms,
        use_state_value_head=use_state_value_head, matmul_dtype=matmul_dtype)
    return value_head_apply(state, W_packed, b_packed, n_cols=n_cols,
                            out_features=out_features, num_atoms=num_atoms,
                            **tile_kwargs)


if __name__ == "__main__":
    # ValueHead(in_features=32, out_features=4, bias=False, num_atoms=4,
    #           use_state_value_head=True, distribution='quantile', num_heads=2)
    in_features = 32
    out_features = 4
    num_atoms = 4
    num_heads = 2
    use_state_value_head = True
    batch = 8

    key = jax.random.PRNGKey(0)
    k1, k2, k3 = jax.random.split(key, 3)
    state = jax.random.normal(k1, (batch, in_features), dtype=jnp.float32)
    # outer_init-style small uniform weights; bias=False -> zero bias arrays.
    Wv = jax.random.uniform(k2, (num_heads, in_features, out_features * num_atoms),
                            minval=-3e-3, maxval=3e-3, dtype=jnp.float32)
    Ws = jax.random.uniform(k3, (num_heads, in_features, num_atoms),
                            minval=-3e-3, maxval=3e-3, dtype=jnp.float32)
    bv = jnp.zeros((num_heads, 1, out_features * num_atoms), jnp.float32)
    bs = jnp.zeros((num_heads, 1, num_atoms), jnp.float32)

    # Weight fusion runs once (cached across steps); the per-step cost is just
    # the Pallas GEMM.
    W_packed, b_packed, n_cols = fuse_value_head_params(
        Wv, bv, Ws, bs, out_features=out_features, num_atoms=num_atoms,
        use_state_value_head=use_state_value_head,
        matmul_dtype=jnp.bfloat16)

    apply_fn = jax.jit(functools.partial(
        value_head_apply, n_cols=n_cols,
        out_features=out_features, num_atoms=num_atoms))
    out = jax.block_until_ready(apply_fn(state, W_packed, b_packed))

    # pure-JAX f32 reference of the PyTorch forward (unfused weights)
    v_ref = jnp.einsum('bf,hfo->bho', state, Wv).reshape(
        batch, num_heads, out_features, num_atoms)                # (B,H,O,A)
    sv_ref = jnp.einsum('bf,hfa->bha', state, Ws)[:, :, None, :]  # (B,H,1,A)
    ref = v_ref - v_ref.mean(axis=2, keepdims=True) + sv_ref

    assert out.shape == (batch, num_heads, out_features, num_atoms), out.shape
    # bf16 matmul operands -> loosen the f32 tolerance accordingly.
    assert jnp.allclose(out, ref, atol=2e-3, rtol=2e-2), \
        float(jnp.max(jnp.abs(out - ref)))
    print("KERNEL_OK")
</pallas_src>

<mosaic_0001>
module attributes {stable_mosaic.version = 11 : i64} {
  func.func @_vh_kernel_single_k(%arg0: i32, %arg1: i32, %arg2: memref<8x32xbf16, #tpu.memory_space<vmem>>, %arg3: memref<32x128xbf16, #tpu.memory_space<vmem>>, %arg4: memref<1x128xf32, #tpu.memory_space<vmem>>, %arg5: memref<8x128xf32, #tpu.memory_space<vmem>>) attributes {dimension_semantics = [#tpu.dimension_semantics<parallel>, #tpu.dimension_semantics<parallel>], iteration_bounds = array<i64: 1, 1>, scalar_prefetch = 0 : i64, scratch_operands = 0 : i64, tpu.core_type = #tpu.core_type<tc>, window_params = [{transform_indices = @transform_0, window_bounds = array<i64: 8, 32>}, {transform_indices = @transform_1, window_bounds = array<i64: 32, 128>}, {transform_indices = @transform_2, window_bounds = array<i64: 1, 128>}, {transform_indices = @transform_3, window_bounds = array<i64: 8, 128>}]} {
    %c0 = arith.constant 0 : index
    %c0_0 = arith.constant 0 : index
    %0 = vector.load %arg2[%c0, %c0_0] : memref<8x32xbf16, #tpu.memory_space<vmem>>, vector<8x32xbf16>
    %c0_1 = arith.constant 0 : index
    %c0_2 = arith.constant 0 : index
    %1 = vector.load %arg3[%c0_1, %c0_2] : memref<32x128xbf16, #tpu.memory_space<vmem>>, vector<32x128xbf16>
    %cst = arith.constant dense<0.000000e+00> : vector<8x128xf32>
    %2 = tpu.matmul %0, %1, %cst {dimension_numbers = #tpu.dot_dimension_numbers<[1], [0], [0], [1], [0, 0, 1, 1], [], []>} : vector<8x32xbf16>, vector<32x128xbf16>, vector<8x128xf32> -> vector<8x128xf32>
    %c0_3 = arith.constant 0 : index
    %c0_4 = arith.constant 0 : index
    %3 = vector.load %arg4[%c0_3, %c0_4] : memref<1x128xf32, #tpu.memory_space<vmem>>, vector<1x128xf32>
    %4 = vector.broadcast %3 : vector<1x128xf32> to vector<8x128xf32>
    %5 = arith.addf %2, %4 : vector<8x128xf32>
    %c0_5 = arith.constant 0 : index
    %c0_6 = arith.constant 0 : index
    %6 = vector.load %arg5[%c0_5, %c0_6] : memref<8x128xf32, #tpu.memory_space<vmem>>, vector<8x128xf32>
    tpu.vector_store %arg5[%c0_5, %c0_6], %5 {strides = array<i32>} : memref<8x128xf32, #tpu.memory_space<vmem>>, vector<8x128xf32>,
    return
  }
  func.func @transform_0(%arg0: i32, %arg1: i32) -> (i32, i32) {
    %c0_i32 = arith.constant 0 : i32
    %c0_i32_0 = arith.constant 0 : i32
    return %arg0, %c0_i32 : i32, i32
  }
  func.func @transform_1(%arg0: i32, %arg1: i32) -> (i32, i32) {
    %c0_i32 = arith.constant 0 : i32
    %c0_i32_0 = arith.constant 0 : i32
    return %c0_i32, %arg1 : i32, i32
  }
  func.func @transform_2(%arg0: i32, %arg1: i32) -> (i32, i32) {
    %c0_i32 = arith.constant 0 : i32
    %c0_i32_0 = arith.constant 0 : i32
    return %c0_i32, %arg1 : i32, i32
  }
  func.func @transform_3(%arg0: i32, %arg1: i32) -> (i32, i32) {
    %c0_i32 = arith.constant 0 : i32
    return %arg0, %arg1 : i32, i32
  }
}

</mosaic_0001>

<bundles_post_ra>
// kernel: value_head_apply.1
= control target key start
LH: loop header
LB: loop body
LE: loop exit
PB: predicated region body
PF: predicated region fallthrough
CT: control target
= control target key end

     0   :  { %8 = vsyncpa [#allocation3], 0  ;;  %s116_s15 = smov [#allocation2]   ;;  %s117_s17 = smov 64   ;;  %s151_s0 = inlined_call_operand.vmem [shape: bf16[8,32], index: 0, kind: input, shape index: {}]   ;;  %s152_s1 = inlined_call_operand.hbm [shape: bf16[32,128], index: 1, kind: input, shape index: {}]   ;;  %s153_s2 = inlined_call_operand.vmem [shape: f32[1,128], index: 2, kind: input, shape index: {}]   ;;  %s154_s3 = inlined_call_operand.vmem [shape: f32[8,128], index: 3, kind: output, shape index: {}]  }
   0x1   :  { %s15_s14 = sshll.u32 %s152_s1, 4  ;;  %s17_s16 = sshll.u32 %s116_s15, 4  ;;  %s16_s14 = int_to_ptr.hbm [resolvable:$true] %s15_s14  ;;  %s18_s16 = int_to_ptr.vmem [resolvable:$true] %s17_s16 }
   0x2   :  { %s118_s18 = smov 4  }
   0x3   :  { %23 = dma.hbm_to_vmem [thread:$0]  %s16_s14, 256, %s18_s16, [#allocation3], %s117_s17, %s117_s17, %s118_s18  }
   0x4   :  { %114 = dma.done.wait [#allocation3], 256  }
   0x5   :  { %115 = vsyncadd [#allocation3], 4294967040  ;;  %v85_v0 = vld [vmem:[#allocation2 + $0x8] sm:$0xff]  ;;  %v84_v1 = vld [vmem:[#allocation2] sm:$0xff]  ;;  %vm52_vm0 = vcmask 261120  }
   0x6   :  { %62 = vmatpush.bf16.msra.mxu0 %v85_v0  ;;  %v31_v2 = vld [vmem:[%s151_s0] sm:$0xf] }
   0x7   :  { %v89_v3 = vld [vmem:[%s153_s2] ss:$0 sm:$0xff] }
   0xa   :  { %63 = vmatpush.bf16.msra.mxu0 %v84_v1 }
   0xd   :  { %83 = vmatmul.msk.bf16.vlgmr.msra.gmra.mxu0 %vm52_vm0, %v31_v2 }
  0x8a   :  { %v65_v4 = vpop.f32.mrf.mxu0 }
  0x8b   :  { %v66_v5 = vadd.f32 %v89_v3, %v65_v4 }
  0x8d   :  { %69 = vst [vmem:[%s154_s3] sm:$0xff] %v66_v5 }
  0x92   :  { %v67_v6 = vpop.f32.mrf.mxu0 }
  0x93   :  { %74 = vsyncpa [#allocation3], 1 }

</bundles_post_ra>
